<compile_context>
chip_gen: v6e
topology: v6e:2x2x1
jax: 0.10.0
libtpu: 0.0.40
codegen_flags: <defaults>
</compile_context>

<pallas_src>
import functools

import jax
import jax.numpy as jnp
from jax.experimental import pallas as pl
from jax.experimental.pallas import tpu as pltpu


def _round_up(x, m):
    return ((x + m - 1) // m) * m


def _cdiv(a, b):
    return -(-a // b)


def _block_diag(a, b):
    """[[a, 0], [0, b]] — fuses the two critics' square/output layers."""
    ra, ca = a.shape
    rb, cb = b.shape
    out = jnp.zeros((ra + rb, ca + cb), a.dtype)
    out = out.at[:ra, :ca].set(a)
    out = out.at[ra:, ca:].set(b)
    return out


def pack_twinned_q_params(params):
    """Fuse + transpose + cast the twin critics' weights ONCE (init time).

    Feature-major packing (every weight stored as W^T, kernel does h = Wt @ x):
      w1: (2*H1, D_in) bf16                         b1: (2*H1, 1) f32
      w2: (2*H2, 2*H1) bf16 block_diag(w2a^T,w2b^T) b2: (2*H2, 1) f32
      w3: (2*nw, 2*H2) bf16 block_diag(w3a^T,w3b^T) b3: (2*nw, 1) f32
    """
    w1a, b1a, w2a, b2a, w3a, b3a = params["q1"]
    w1b, b1b, w2b, b2b, w3b, b3b = params["q2"]
    bf16, f32 = jnp.bfloat16, jnp.float32
    return {
        "w1": jnp.concatenate([w1a, w1b], axis=1).T.astype(bf16),
        "b1": jnp.concatenate([b1a, b1b], axis=1).T.astype(f32),
        "w2": _block_diag(w2a.T, w2b.T).astype(bf16),
        "b2": jnp.concatenate([b2a, b2b], axis=1).T.astype(f32),
        "w3": _block_diag(w3a.T, w3b.T).astype(bf16),
        "b3": jnp.concatenate([b3a, b3b], axis=1).T.astype(f32),
    }


def twinned_q_kernel(x_ref, w1_ref, b1_ref, w2_ref, b2_ref, w3_ref, b3_ref,
                     out_ref, *, split_heads):
    """One lane-tile of the batch, both critics, feature-major MXU matmuls.

    x_ref:(D_in,TB) bf16 -> h:(2H1,TB) -> g:(2H2,TB) -> out:(2nw,TB) f32.
    """
    # Layer 1 — always fused: the concatenated W1 has no zero blocks.
    h = jnp.dot(w1_ref[...], x_ref[...], preferred_element_type=jnp.float32)
    h = jnp.maximum(h + b1_ref[...], 0.0).astype(jnp.bfloat16)

    if not split_heads:
        # v6e / v7x: 256-wide block-diagonal matmuls exactly fill the 256x256 MXU.
        g = jnp.dot(w2_ref[...], h, preferred_element_type=jnp.float32)
        g = jnp.maximum(g + b2_ref[...], 0.0).astype(jnp.bfloat16)
        out_ref[...] = (
            jnp.dot(w3_ref[...], g, preferred_element_type=jnp.float32)
            + b3_ref[...])
    else:
        # v5e / v4 (128-wide MXU): per-head dots skip the all-zero off-diagonal
        # quadrants of the block-diagonal weights (~2x fewer layer-2 pushes).
        h1 = w1_ref.shape[0] // 2
        h2 = w2_ref.shape[0] // 2
        nw = out_ref.shape[0] // 2
        ha, hb = h[:h1], h[h1:]
        ga = jnp.maximum(
            jnp.dot(w2_ref[:h2, :h1], ha, preferred_element_type=jnp.float32)
            + b2_ref[:h2], 0.0).astype(jnp.bfloat16)
        gb = jnp.maximum(
            jnp.dot(w2_ref[h2:, h1:], hb, preferred_element_type=jnp.float32)
            + b2_ref[h2:], 0.0).astype(jnp.bfloat16)
        out_ref[:nw] = (
            jnp.dot(w3_ref[:nw, :h2], ga, preferred_element_type=jnp.float32)
            + b3_ref[:nw])
        out_ref[nw:] = (
            jnp.dot(w3_ref[nw:, h2:], gb, preferred_element_type=jnp.float32)
            + b3_ref[nw:])


def _choose_batch_tile(batch, tile_batch, num_cores):
    """Lane-tile size: multiple of 128, minimal padding, grid split per core."""
    n_tiles = max(1, _cdiv(batch, tile_batch))
    if num_cores > 1:
        n_mc = _round_up(n_tiles, num_cores)
        if _cdiv(batch, n_mc) >= 128:   # each core still gets a full lane tile
            n_tiles = n_mc
    tb = _round_up(_cdiv(batch, n_tiles), 128)
    return tb, _round_up(batch, tb)


@functools.partial(jax.jit,
                   static_argnames=("tile_batch", "split_heads", "num_cores"))
def twinned_q_forward(states, actions, preferences, packed, *,
                      tile_batch=2048, split_heads=False, num_cores=1):
    """Per-step forward: one lane-dense concat/transpose + one pallas_call."""
    B = states.shape[0]
    w1, b1, w2, b2, w3, b3 = (packed[k] for k in ("w1", "b1", "w2", "b2",
                                                  "w3", "b3"))
    d_in, two_h1 = w1.shape[1], w1.shape[0]
    two_h2, two_nw = w2.shape[0], w3.shape[0]
    nw = two_nw // 2
    assert states.shape[1] + actions.shape[1] + preferences.shape[1] == d_in

    # Single lane-dense feature-major input slab (D_in, B), bf16.
    x = jnp.concatenate([states, actions, preferences], axis=1)
    x = x.astype(jnp.bfloat16).T

    tb, bp = _choose_batch_tile(B, tile_batch, num_cores)
    if bp != B:
        x = jnp.pad(x, ((0, 0), (0, bp - B)))

    def resident(arr):   # grid-invariant, VMEM-resident weight/bias
        return pl.BlockSpec(arr.shape, lambda i: (0, 0))

    flops = 2 * bp * (d_in * two_h1 + two_h1 * two_h2 + two_h2 * two_nw)
    bytes_accessed = int(
        x.size * x.dtype.itemsize + bp * two_nw * 4
        + sum(int(a.size) * a.dtype.itemsize for a in (w1, b1, w2, b2, w3, b3)))

    q_both = pl.pallas_call(
        functools.partial(twinned_q_kernel, split_heads=split_heads),
        out_shape=jax.ShapeDtypeStruct((two_nw, bp), jnp.float32),
        grid=(bp // tb,),
        in_specs=[
            pl.BlockSpec((d_in, tb), lambda i: (0, i)),   # batch-tiled input
            resident(w1), resident(b1),
            resident(w2), resident(b2),
            resident(w3), resident(b3),
        ],
        out_specs=pl.BlockSpec((two_nw, tb), lambda i: (0, i)),
        compiler_params=pltpu.CompilerParams(
            dimension_semantics=("parallel",),            # megacore batch split
        ),
        cost_estimate=pl.CostEstimate(flops=flops, transcendentals=0,
                                      bytes_accessed=bytes_accessed),
    )(x, w1, b1, w2, b2, w3, b3)

    q_both = q_both[:, :B].T                               # (B, 2*nw) f32
    return q_both[:, :nw], q_both[:, nw:]


def _device_defaults():
    """Static per-chip choices: head split (MXU width) and TensorCore count."""
    try:
        kind = jax.devices()[0].device_kind.lower()
    except Exception:
        return False, 1
    split_heads = any(t in kind for t in ("v2", "v3", "v4", "v5"))  # 128-wide MXU
    num_cores = 2 if any(t in kind for t in ("v4", "v5p", "7")) else 1
    return split_heads, num_cores


def init_q_params(key, d_in, hidden, d_out):
    """Deterministic xavier-uniform weights, zero biases (synthetic init)."""
    dims = [d_in] + list(hidden) + [d_out]
    xavier = jax.nn.initializers.xavier_uniform()
    params = []
    for i in range(len(dims) - 1):
        key, sub = jax.random.split(key)
        w = xavier(sub, (dims[i], dims[i + 1]), jnp.float32)
        b = jnp.zeros((1, dims[i + 1]), jnp.float32)
        params.extend([w, b])
    return tuple(params), key


if __name__ == "__main__":
    # Small, module-consistent shapes (H=128 -> fused hidden width 256).
    batch = 2
    num_inputs, num_actions, num_weights = 8, 4, 4
    hidden_units = [128, 128]
    d_in = num_inputs + num_actions + num_weights

    key = jax.random.PRNGKey(0)
    k_s, k_a, k_p, k_w = jax.random.split(key, 4)

    states = jax.random.normal(k_s, (batch, num_inputs), jnp.float32)
    actions = jax.random.normal(k_a, (batch, num_actions), jnp.float32)
    preferences = jax.random.normal(k_p, (batch, num_weights), jnp.float32)

    q1_params, k_w = init_q_params(k_w, d_in, hidden_units, num_weights)
    q2_params, _ = init_q_params(k_w, d_in, hidden_units, num_weights)
    params = {"q1": q1_params, "q2": q2_params}

    # Pack the twin critics ONCE (init / param-update time), not per forward.
    packed = pack_twinned_q_params(params)
    split_heads, num_cores = _device_defaults()

    q1, q2 = twinned_q_forward(states, actions, preferences, packed,
                               split_heads=split_heads, num_cores=num_cores)
    jax.block_until_ready((q1, q2))

    # Pure-JAX f32 reference of the same math (bf16 MXU -> looser tolerance).
    def ref_mlp(x, p):
        w1, b1, w2, b2, w3, b3 = p
        h = jnp.maximum(x @ w1 + b1, 0.0)
        h = jnp.maximum(h @ w2 + b2, 0.0)
        return h @ w3 + b3

    x = jnp.concatenate([states, actions, preferences], axis=1)
    r1 = ref_mlp(x, q1_params)
    r2 = ref_mlp(x, q2_params)

    assert q1.shape == (batch, num_weights) and q2.shape == (batch, num_weights)
    err = max(float(jnp.max(jnp.abs(q1 - r1))), float(jnp.max(jnp.abs(q2 - r2))))
    assert err < 5e-2, f"max abs error {err} too large"

    print("KERNEL_OK")
</pallas_src>

<mosaic_0001>
module attributes {stable_mosaic.version = 11 : i64} {
  func.func @twinned_q_kernel(%arg0: i32, %arg1: memref<16x128xbf16, #tpu.memory_space<vmem>>, %arg2: memref<256x16xbf16, #tpu.memory_space<vmem>>, %arg3: memref<256x1xf32, #tpu.memory_space<vmem>>, %arg4: memref<256x256xbf16, #tpu.memory_space<vmem>>, %arg5: memref<256x1xf32, #tpu.memory_space<vmem>>, %arg6: memref<8x256xbf16, #tpu.memory_space<vmem>>, %arg7: memref<8x1xf32, #tpu.memory_space<vmem>>, %arg8: memref<8x128xf32, #tpu.memory_space<vmem>>) attributes {dimension_semantics = [#tpu.dimension_semantics<parallel>], iteration_bounds = array<i64: 1>, scalar_prefetch = 0 : i64, scratch_operands = 0 : i64, tpu.core_type = #tpu.core_type<tc>, window_params = [{transform_indices = @transform_0, window_bounds = array<i64: 16, 128>}, {pipeline_mode = #tpu.pipeline_mode<synchronous>, transform_indices = @transform_1, window_bounds = array<i64: 256, 16>}, {pipeline_mode = #tpu.pipeline_mode<synchronous>, transform_indices = @transform_2, window_bounds = array<i64: 256, 1>}, {pipeline_mode = #tpu.pipeline_mode<synchronous>, transform_indices = @transform_3, window_bounds = array<i64: 256, 256>}, {pipeline_mode = #tpu.pipeline_mode<synchronous>, transform_indices = @transform_4, window_bounds = array<i64: 256, 1>}, {pipeline_mode = #tpu.pipeline_mode<synchronous>, transform_indices = @transform_5, window_bounds = array<i64: 8, 256>}, {pipeline_mode = #tpu.pipeline_mode<synchronous>, transform_indices = @transform_6, window_bounds = array<i64: 8, 1>}, {transform_indices = @transform_7, window_bounds = array<i64: 8, 128>}]} {
    %c0 = arith.constant 0 : index
    %c0_0 = arith.constant 0 : index
    %0 = vector.load %arg2[%c0, %c0_0] : memref<256x16xbf16, #tpu.memory_space<vmem>>, vector<256x16xbf16>
    %c0_1 = arith.constant 0 : index
    %c0_2 = arith.constant 0 : index
    %1 = vector.load %arg1[%c0_1, %c0_2] : memref<16x128xbf16, #tpu.memory_space<vmem>>, vector<16x128xbf16>
    %cst = arith.constant dense<0.000000e+00> : vector<256x128xf32>
    %2 = tpu.matmul %0, %1, %cst {dimension_numbers = #tpu.dot_dimension_numbers<[1], [0], [0], [1], [0, 0, 1, 1], [], []>} : vector<256x16xbf16>, vector<16x128xbf16>, vector<256x128xf32> -> vector<256x128xf32>
    %c0_3 = arith.constant 0 : index
    %c0_4 = arith.constant 0 : index
    %3 = vector.load %arg3[%c0_3, %c0_4] : memref<256x1xf32, #tpu.memory_space<vmem>>, vector<256x1xf32>
    %4 = vector.broadcast %3 : vector<256x1xf32> to vector<256x128xf32>
    %5 = arith.addf %2, %4 : vector<256x128xf32>
    %cst_5 = arith.constant 0.000000e+00 : f32
    %6 = vector.broadcast %cst_5 : f32 to vector<256x128xf32>
    %7 = arith.maximumf %5, %6 : vector<256x128xf32>
    %8 = arith.truncf %7 : vector<256x128xf32> to vector<256x128xbf16>
    %c0_6 = arith.constant 0 : index
    %c0_7 = arith.constant 0 : index
    %9 = vector.load %arg4[%c0_6, %c0_7] : memref<256x256xbf16, #tpu.memory_space<vmem>>, vector<256x256xbf16>
    %cst_8 = arith.constant dense<0.000000e+00> : vector<256x128xf32>
    %10 = tpu.matmul %9, %8, %cst_8 {dimension_numbers = #tpu.dot_dimension_numbers<[1], [0], [0], [1], [0, 0, 1, 1], [], []>} : vector<256x256xbf16>, vector<256x128xbf16>, vector<256x128xf32> -> vector<256x128xf32>
    %c0_9 = arith.constant 0 : index
    %c0_10 = arith.constant 0 : index
    %11 = vector.load %arg5[%c0_9, %c0_10] : memref<256x1xf32, #tpu.memory_space<vmem>>, vector<256x1xf32>
    %12 = vector.broadcast %11 : vector<256x1xf32> to vector<256x128xf32>
    %13 = arith.addf %10, %12 : vector<256x128xf32>
    %cst_11 = arith.constant 0.000000e+00 : f32
    %14 = vector.broadcast %cst_11 : f32 to vector<256x128xf32>
    %15 = arith.maximumf %13, %14 : vector<256x128xf32>
    %16 = arith.truncf %15 : vector<256x128xf32> to vector<256x128xbf16>
    %c0_12 = arith.constant 0 : index
    %c0_13 = arith.constant 0 : index
    %17 = vector.load %arg6[%c0_12, %c0_13] : memref<8x256xbf16, #tpu.memory_space<vmem>>, vector<8x256xbf16>
    %cst_14 = arith.constant dense<0.000000e+00> : vector<8x128xf32>
    %18 = tpu.matmul %17, %16, %cst_14 {dimension_numbers = #tpu.dot_dimension_numbers<[1], [0], [0], [1], [0, 0, 1, 1], [], []>} : vector<8x256xbf16>, vector<256x128xbf16>, vector<8x128xf32> -> vector<8x128xf32>
    %c0_15 = arith.constant 0 : index
    %c0_16 = arith.constant 0 : index
    %19 = vector.load %arg7[%c0_15, %c0_16] : memref<8x1xf32, #tpu.memory_space<vmem>>, vector<8x1xf32>
    %20 = vector.broadcast %19 : vector<8x1xf32> to vector<8x128xf32>
    %21 = arith.addf %18, %20 : vector<8x128xf32>
    %c0_17 = arith.constant 0 : index
    %c0_18 = arith.constant 0 : index
    %22 = vector.load %arg8[%c0_17, %c0_18] : memref<8x128xf32, #tpu.memory_space<vmem>>, vector<8x128xf32>
    tpu.vector_store %arg8[%c0_17, %c0_18], %21 {strides = array<i32>} : memref<8x128xf32, #tpu.memory_space<vmem>>, vector<8x128xf32>,
    return
  }
  func.func @transform_0(%arg0: i32) -> (i32, i32) {
    %c0_i32 = arith.constant 0 : i32
    %c0_i32_0 = arith.constant 0 : i32
    return %c0_i32, %arg0 : i32, i32
  }
  func.func @transform_1(%arg0: i32) -> (i32, i32) {
    %c0_i32 = arith.constant 0 : i32
    %c0_i32_0 = arith.constant 0 : i32
    %c0_i32_1 = arith.constant 0 : i32
    return %c0_i32, %c0_i32_0 : i32, i32
  }
  func.func @transform_2(%arg0: i32) -> (i32, i32) {
    %c0_i32 = arith.constant 0 : i32
    %c0_i32_0 = arith.constant 0 : i32
    %c0_i32_1 = arith.constant 0 : i32
    return %c0_i32, %c0_i32_0 : i32, i32
  }
  func.func @transform_3(%arg0: i32) -> (i32, i32) {
    %c0_i32 = arith.constant 0 : i32
    %c0_i32_0 = arith.constant 0 : i32
    %c0_i32_1 = arith.constant 0 : i32
    return %c0_i32, %c0_i32_0 : i32, i32
  }
  func.func @transform_4(%arg0: i32) -> (i32, i32) {
    %c0_i32 = arith.constant 0 : i32
    %c0_i32_0 = arith.constant 0 : i32
    %c0_i32_1 = arith.constant 0 : i32
    return %c0_i32, %c0_i32_0 : i32, i32
  }
  func.func @transform_5(%arg0: i32) -> (i32, i32) {
    %c0_i32 = arith.constant 0 : i32
    %c0_i32_0 = arith.constant 0 : i32
    %c0_i32_1 = arith.constant 0 : i32
    return %c0_i32, %c0_i32_0 : i32, i32
  }
  func.func @transform_6(%arg0: i32) -> (i32, i32) {
    %c0_i32 = arith.constant 0 : i32
    %c0_i32_0 = arith.constant 0 : i32
    %c0_i32_1 = arith.constant 0 : i32
    return %c0_i32, %c0_i32_0 : i32, i32
  }
  func.func @transform_7(%arg0: i32) -> (i32, i32) {
    %c0_i32 = arith.constant 0 : i32
    %c0_i32_0 = arith.constant 0 : i32
    return %c0_i32, %arg0 : i32, i32
  }
}

</mosaic_0001>

<bundles_post_ra>
// kernel: twinned_q_forward.1
= control target key start
LH: loop header
LB: loop body
LE: loop exit
PB: predicated region body
PF: predicated region fallthrough
CT: control target
= control target key end

     0   :  { %v1587_v0 = vmov 0   ;;  %vm339_vm0 = vcmask 130048   ;;  %s2227_s2 = inlined_call_operand.vmem [shape: f32[256,1], index: 2, kind: input, shape index: {}]   ;;  %s2228_s0 = inlined_call_operand.vmem [shape: bf16[16,128], index: 0, kind: input, shape index: {}]   ;;  %s2229_s1 = inlined_call_operand.vmem [shape: bf16[256,16], index: 1, kind: input, shape index: {}]   ;;  %s2230_s4 = inlined_call_operand.vmem [shape: f32[256,1], index: 4, kind: input, shape index: {}]   ;;  %s2231_s6 = inlined_call_operand.vmem [shape: f32[8,1], index: 6, kind: input, shape index: {}]   ;;  %s2232_s3 = inlined_call_operand.vmem [shape: bf16[256,256], index: 3, kind: input, shape index: {}]   ;;  %s2233_s5 = inlined_call_operand.vmem [shape: bf16[8,256], index: 5, kind: input, shape index: {}]   ;;  %s2234_s7 = inlined_call_operand.vmem [shape: f32[8,128], index: 7, kind: output, shape index: {}]  }
   0x1   :  { %1519 = vset.pattern.permute.xlu1 %v1587_v0  ;;  %1518 = vset.pattern.permute.xlu0 %v1587_v0  ;;  %v91_v1 = vld [vmem:[%s2227_s2 + $0xf0] sm:$0xff]  ;;  %v1520_v3 = vld [vmem:[%s2228_s0] sm:$0xff]   ;;  %v92_v4 = vld [vmem:[%s2227_s2 + $0xf8] sm:$0xff] }
   0x2   :  { %v75_v2 = vld [vmem:[%s2227_s2 + $0x70] sm:$0xff]  ;;  %245 = vperm.xlu0 %1518, %v91_v1   ;;  %v76_v5 = vld [vmem:[%s2227_s2 + $0x78] sm:$0xff]  ;;  %1467 = vmatprep.subr.bf16.mxu0 %v1520_v3  ;;  %v1521_v6 = vld [vmem:[%s2229_s1] sm:$0xff]  }
   0x3   :  { %165 = vperm.xlu1 %1519, %v75_v2   ;;  %1468 = vmatpush3.bf16.msra.mxu0 %v1520_v3  ;;  %v1522_v7 = vld [vmem:[%s2229_s1 + $0x8] sm:$0xff]   ;;  %v89_v8 = vld [vmem:[%s2227_s2 + $0xe0] sm:$0xff]  ;;  %v1523_v10 = vld [vmem:[%s2229_s1 + $0x10] sm:$0xff]  }
   0x4   :  { %v90_v9 = vld [vmem:[%s2227_s2 + $0xe8] sm:$0xff]  ;;  %1469 = vmatprep.mubr.msk.bf16.mxu0 %vm339_vm0, %v1521_v6  ;;  %v73_v12 = vld [vmem:[%s2227_s2 + $0x60] sm:$0xff]  ;;  %v1524_v13 = vld [vmem:[%s2229_s1 + $0x18] sm:$0xff]  }
   0x5   :  { %v74_v11 = vld [vmem:[%s2227_s2 + $0x68] sm:$0xff]  ;;  %v1525_v14 = vld [vmem:[%s2229_s1 + $0x20] sm:$0xff]   ;;  %v88_v15 = vld [vmem:[%s2227_s2 + $0xd8] sm:$0xff] }
   0x6   :  { %250 = vperm.xlu0 %1518, %v92_v4   ;;  %1470 = vmatmul.mubr.msk.bf16.vlgmr.msra.gmra.mxu0 %vm339_vm0, %v1522_v7  ;;  %v87_v16 = vld [vmem:[%s2227_s2 + $0xd0] sm:$0xff]  ;;  %v72_v17 = vld [vmem:[%s2227_s2 + $0x58] sm:$0xff]  ;;  %v1526_v19 = vld [vmem:[%s2229_s1 + $0x28] sm:$0xff]  }
   0x7   :  { %170 = vperm.xlu1 %1519, %v76_v5   ;;  %1473 = vmatprep.mubr.msk.bf16.mxu0 %vm339_vm0, %v1523_v10  ;;  %v71_v18 = vld [vmem:[%s2227_s2 + $0x50] sm:$0xff]  ;;  %v86_v21 = vld [vmem:[%s2227_s2 + $0xc8] sm:$0xff]  ;;  %v85_v22 = vld [vmem:[%s2227_s2 + $0xc0] sm:$0xff] }
   0x8   :  { %v1527_v20 = vld [vmem:[%s2229_s1 + $0x30] sm:$0xff]   ;;  %v70_v23 = vld [vmem:[%s2227_s2 + $0x48] sm:$0xff]  ;;  %v69_v24 = vld [vmem:[%s2227_s2 + $0x40] sm:$0xff] }
   0x9   :  { %v1528_v25 = vld [vmem:[%s2229_s1 + $0x38] sm:$0xff]   ;;  %v1529_v26 = vld [vmem:[%s2229_s1 + $0x40] sm:$0xff]   ;;  %v83_v28 = vld [vmem:[%s2227_s2 + $0xb0] sm:$0xff] }
   0xa   :  { %235 = vperm.xlu0 %1518, %v89_v8   ;;  %v84_v27 = vld [vmem:[%s2227_s2 + $0xb8] sm:$0xff]  ;;  %v67_v30 = vld [vmem:[%s2227_s2 + $0x30] sm:$0xff]  ;;  %v1530_v31 = vld [vmem:[%s2229_s1 + $0x48] sm:$0xff]  }
   0xb   :  { %240 = vperm.xlu1 %1519, %v90_v9   ;;  %v68_v29 = vld [vmem:[%s2227_s2 + $0x38] sm:$0xff]  ;;  %v1531_v32 = vld [vmem:[%s2229_s1 + $0x50] sm:$0xff]   ;;  %v82_v33 = vld [vmem:[%s2227_s2 + $0xa8] sm:$0xff] }
   0xc   :  { %v81_v34 = vld [vmem:[%s2227_s2 + $0xa0] sm:$0xff]  ;;  %v66_v35 = vld [vmem:[%s2227_s2 + $0x28] sm:$0xff]  ;;  %v1532_v37 = vld [vmem:[%s2229_s1 + $0x58] sm:$0xff]  }
   0xd   :  { %v65_v36 = vld [vmem:[%s2227_s2 + $0x20] sm:$0xff]  ;;  %v80_v39 = vld [vmem:[%s2227_s2 + $0x98] sm:$0xff]  ;;  %v79_v40 = vld [vmem:[%s2227_s2 + $0x90] sm:$0xff] }
   0xe   :  { %155 = vperm.xlu0 %1518, %v73_v12   ;;  %1474 = vmatmul.mubr.msk.bf16.gmra.mxu0 %vm339_vm0, %v1524_v13  ;;  %v1533_v38 = vld [vmem:[%s2229_s1 + $0x60] sm:$0xff]   ;;  %v64_v41 = vld [vmem:[%s2227_s2 + $0x18] sm:$0xff]  ;;  %v63_v42 = vld [vmem:[%s2227_s2 + $0x10] sm:$0xff] }
   0xf   :  { %160 = vperm.xlu1 %1519, %v74_v11   ;;  %1477 = vmatprep.mubr.msk.bf16.mxu0 %vm339_vm0, %v1525_v14  ;;  %v1534_v43 = vld [vmem:[%s2229_s1 + $0x68] sm:$0xff]   ;;  %v1535_v44 = vld [vmem:[%s2229_s1 + $0x70] sm:$0xff]   ;;  %v77_v46 = vld [vmem:[%s2227_s2 + $0x80] sm:$0xff] }
  0x10   :  { %v78_v45 = vld [vmem:[%s2227_s2 + $0x88] sm:$0xff]  ;;  %v61_v48 = vld [vmem:[%s2227_s2] sm:$0xff]  ;;  %v1536_v49 = vld [vmem:[%s2229_s1 + $0x78] sm:$0xff]  }
  0x11   :  { %v62_v47 = vld [vmem:[%s2227_s2 + $0x8] sm:$0xff]  ;;  %v660_v50 = vld [vmem:[%s2230_s4 + $0xf8] sm:$0xff]  ;;  %v659_v51 = vld [vmem:[%s2230_s4 + $0xf0] sm:$0xff] }
  0x12   :  { %225 = vperm.xlu0 %1518, %v87_v16   ;;  %v644_v52 = vld [vmem:[%s2230_s4 + $0x78] sm:$0xff]  ;;  %v643_v53 = vld [vmem:[%s2230_s4 + $0x70] sm:$0xff]  ;;  %v658_v54 = vld [vmem:[%s2230_s4 + $0xe8] sm:$0xff] }
  0x13   :  { %230 = vperm.xlu1 %1519, %v88_v15   ;;  %v657_v55 = vld [vmem:[%s2230_s4 + $0xe0] sm:$0xff]  ;;  %v642_v56 = vld [vmem:[%s2230_s4 + $0x68] sm:$0xff]  ;;  %v656_v58 = vld [vmem:[%s2230_s4 + $0xd8] sm:$0xff] }
  0x14   :  { %v641_v57 = vld [vmem:[%s2230_s4 + $0x60] sm:$0xff]  ;;  %v655_v59 = vld [vmem:[%s2230_s4 + $0xd0] sm:$0xff]  ;;  %v640_v60 = vld [vmem:[%s2230_s4 + $0x58] sm:$0xff] }
  0x15   :  { %v639_v61 = vld [vmem:[%s2230_s4 + $0x50] sm:$0xff]  ;;  %v654_v62 = vld [vmem:[%s2230_s4 + $0xc8] sm:$0xff]  ;;  %v653_v63 = vld [vmem:[%s2230_s4 + $0xc0] sm:$0xff] }
  0x16   :  { %145 = vperm.xlu0 %1518, %v71_v18   ;;  %1478 = vmatmul.mubr.msk.bf16.gmra.mxu0 %vm339_vm0, %v1526_v19  ;;  %v638_v0 = vld [vmem:[%s2230_s4 + $0x48] sm:$0xff]  ;;  %v637_v1 = vld [vmem:[%s2230_s4 + $0x40] sm:$0xff]  ;;  %v652_v2 = vld [vmem:[%s2230_s4 + $0xb8] sm:$0xff] }
  0x17   :  { %150 = vperm.xlu1 %1519, %v72_v17   ;;  %1481 = vmatprep.mubr.msk.bf16.mxu0 %vm339_vm0, %v1527_v20  ;;  %v651_v3 = vld [vmem:[%s2230_s4 + $0xb0] sm:$0xff]  ;;  %v636_v4 = vld [vmem:[%s2230_s4 + $0x38] sm:$0xff]  ;;  %v650_v6 = vld [vmem:[%s2230_s4 + $0xa8] sm:$0xff] }
  0x18   :  { %v635_v5 = vld [vmem:[%s2230_s4 + $0x30] sm:$0xff]  ;;  %v649_v7 = vld [vmem:[%s2230_s4 + $0xa0] sm:$0xff]  ;;  %v634_v8 = vld [vmem:[%s2230_s4 + $0x28] sm:$0xff] }
  0x19   :  { %v633_v9 = vld [vmem:[%s2230_s4 + $0x20] sm:$0xff]  ;;  %v648_v10 = vld [vmem:[%s2230_s4 + $0x98] sm:$0xff]  ;;  %v647_v11 = vld [vmem:[%s2230_s4 + $0x90] sm:$0xff] }
  0x1a   :  { %215 = vperm.xlu0 %1518, %v85_v22   ;;  %v632_v12 = vld [vmem:[%s2230_s4 + $0x18] sm:$0xff]  ;;  %v631_v13 = vld [vmem:[%s2230_s4 + $0x10] sm:$0xff]  ;;  %v646_v14 = vld [vmem:[%s2230_s4 + $0x88] sm:$0xff] }
  0x1b   :  { %220 = vperm.xlu1 %1519, %v86_v21   ;;  %v645_v15 = vld [vmem:[%s2230_s4 + $0x80] sm:$0xff]  ;;  %v630_v16 = vld [vmem:[%s2230_s4 + $0x8] sm:$0xff] }
  0x1c   :  { %v629_v17 = vld [vmem:[%s2230_s4] sm:$0xff] }
  0x1d   :  { %v1191_v20 = vld [vmem:[%s2231_s6] sm:$0xff] }
  0x1e   :  { %135 = vperm.xlu0 %1518, %v69_v24   ;;  %1482 = vmatmul.mubr.msk.bf16.gmra.mxu0 %vm339_vm0, %v1528_v25 }
  0x1f   :  { %140 = vperm.xlu1 %1519, %v70_v23   ;;  %1485 = vmatprep.mubr.msk.bf16.mxu0 %vm339_vm0, %v1529_v26 }
  0x22   :  { %205 = vperm.xlu0 %1518, %v83_v28  }
  0x23   :  { %210 = vperm.xlu1 %1519, %v84_v27  }
  0x26   :  { %125 = vperm.xlu0 %1518, %v67_v30   ;;  %1486 = vmatmul.mubr.msk.bf16.gmra.mxu0 %vm339_vm0, %v1530_v31 }
  0x27   :  { %130 = vperm.xlu1 %1519, %v68_v29   ;;  %1489 = vmatprep.mubr.msk.bf16.mxu0 %vm339_vm0, %v1531_v32 }
  0x2a   :  { %195 = vperm.xlu0 %1518, %v81_v34  }
  0x2b   :  { %200 = vperm.xlu1 %1519, %v82_v33  }
  0x2e   :  { %115 = vperm.xlu0 %1518, %v65_v36   ;;  %1490 = vmatmul.mubr.msk.bf16.gmra.mxu0 %vm339_vm0, %v1532_v37 }
  0x2f   :  { %120 = vperm.xlu1 %1519, %v66_v35   ;;  %1493 = vmatprep.mubr.msk.bf16.mxu0 %vm339_vm0, %v1533_v38  ;;  %v1539_v38 = vld [vmem:[%s2232_s3 + $0x4] ss:$8 sps:$4 sm:$0xff]  }
  0x32   :  { %185 = vperm.xlu0 %1518, %v79_v40   ;;  %v1542_v40 = vld [vmem:[%s2232_s3 + $0x54] ss:$8 sps:$4 sm:$0xff]  }
  0x33   :  { %190 = vperm.xlu1 %1519, %v80_v39   ;;  %1053 = vmatprep.mubr.bf16.mxu1 %v1542_v40 }
  0x36   :  { %105 = vperm.xlu0 %1518, %v63_v42   ;;  %1494 = vmatmul.mubr.msk.bf16.gmra.mxu0 %vm339_vm0, %v1534_v43 }
  0x37   :  { %110 = vperm.xlu1 %1519, %v64_v41   ;;  %1497 = vmatprep.mubr.msk.bf16.mxu0 %vm339_vm0, %v1535_v44 }
  0x3a   :  { %175 = vperm.xlu0 %1518, %v77_v46  }
  0x3b   :  { %180 = vperm.xlu1 %1519, %v78_v45  }
  0x3e   :  { %95 = vperm.xlu0 %1518, %v61_v48   ;;  %1498 = vmatmul.mubr.msk.bf16.gmra.mxu0 %vm339_vm0, %v1536_v49 }
  0x3f   :  { %100 = vperm.xlu1 %1519, %v62_v47   ;;  %1013 = vmatprep.mubr.bf16.mxu0 %v1539_v38 }
  0x42   :  { %813 = vperm.xlu0 %1518, %v659_v51  }
  0x43   :  { %818 = vperm.xlu1 %1519, %v660_v50  }
  0x46   :  { %733 = vperm.xlu0 %1518, %v643_v53  }
  0x47   :  { %738 = vperm.xlu1 %1519, %v644_v52  }
  0x4a   :  { %803 = vperm.xlu0 %1518, %v657_v55  }
  0x4b   :  { %808 = vperm.xlu1 %1519, %v658_v54  }
  0x4e   :  { %723 = vperm.xlu0 %1518, %v641_v57  }
  0x4f   :  { %728 = vperm.xlu1 %1519, %v642_v56  }
  0x52   :  { %793 = vperm.xlu0 %1518, %v655_v59  }
  0x53   :  { %798 = vperm.xlu1 %1519, %v656_v58  }
  0x56   :  { %713 = vperm.xlu0 %1518, %v639_v61  }
  0x57   :  { %718 = vperm.xlu1 %1519, %v640_v60  }
  0x5a   :  { %783 = vperm.xlu0 %1518, %v653_v63  }
  0x5b   :  { %788 = vperm.xlu1 %1519, %v654_v62  }
  0x5e   :  { %703 = vperm.xlu0 %1518, %v637_v1  }
  0x5f   :  { %708 = vperm.xlu1 %1519, %v638_v0  }
  0x62   :  { %773 = vperm.xlu0 %1518, %v651_v3  }
  0x63   :  { %778 = vperm.xlu1 %1519, %v652_v2  }
  0x66   :  { %693 = vperm.xlu0 %1518, %v635_v5  }
  0x67   :  { %698 = vperm.xlu1 %1519, %v636_v4  }
  0x6a   :  { %763 = vperm.xlu0 %1518, %v649_v7  }
  0x6b   :  { %768 = vperm.xlu1 %1519, %v650_v6  }
  0x6e   :  { %683 = vperm.xlu0 %1518, %v633_v9  }
  0x6f   :  { %688 = vperm.xlu1 %1519, %v634_v8  }
  0x72   :  { %753 = vperm.xlu0 %1518, %v647_v11  }
  0x73   :  { %758 = vperm.xlu1 %1519, %v648_v10  }
  0x76   :  { %673 = vperm.xlu0 %1518, %v631_v13  }
  0x77   :  { %678 = vperm.xlu1 %1519, %v632_v12  }
  0x7a   :  { %743 = vperm.xlu0 %1518, %v645_v15  }
  0x7b   :  { %748 = vperm.xlu1 %1519, %v646_v14  }
  0x7d   :  { %v1887_v18 = vpop.permute.xlu0 %245 }
  0x7e   :  { %v1889_v19 = vpop.permute.xlu1 %165  ;;  %663 = vperm.xlu0 %1518, %v629_v17  }
  0x7f   :  { %668 = vperm.xlu1 %1519, %v630_v16  }
  0x81   :  { %v1894_v21 = vpop.permute.xlu0 %250 }
  0x82   :  { %v1896_v22 = vpop.permute.xlu1 %170  ;;  %1194 = vperm.xlu0 %1518, %v1191_v20  }
  0x85   :  { %v1898_v23 = vpop.permute.xlu0 %235 }
  0x86   :  { %v1900_v24 = vpop.permute.xlu1 %240 }
  0x89   :  { %v1904_v26 = vpop.permute.xlu0 %155 }
  0x8a   :  { %v1902_v25 = vpop.permute.xlu1 %160 }
  0x8d   :  { %v1908_v28 = vpop.permute.xlu0 %225 }
  0x8e   :  { %v1906_v27 = vpop.permute.xlu1 %230 }
  0x91   :  { %v1910_v29 = vpop.permute.xlu0 %145 }
  0x92   :  { %v1912_v30 = vpop.permute.xlu1 %150 }
  0x95   :  { %v1914_v31 = vpop.permute.xlu0 %215 }
  0x96   :  { %v1916_v32 = vpop.permute.xlu1 %220 }
  0x99   :  { %v1918_v33 = vpop.permute.xlu0 %135 }
  0x9a   :  { %v1920_v34 = vpop.permute.xlu1 %140 }
  0x9d   :  { %v1922_v35 = vpop.permute.xlu0 %205 }
  0x9e   :  { %v1924_v36 = vpop.permute.xlu1 %210 }
  0xa1   :  { %v126_v37 = vpop.permute.xlu0 %125 }
  0xa2   :  { %v131_v39 = vpop.permute.xlu1 %130 }
  0xa5   :  { %v1932_v41 = vpop.permute.xlu0 %195 }
  0xa6   :  { %v1934_v42 = vpop.permute.xlu1 %200 }
  0xa9   :  { %v116_v43 = vpop.permute.xlu0 %115 }
  0xaa   :  { %v121_v44 = vpop.permute.xlu1 %120 }
  0xad   :  { %v1936_v45 = vpop.permute.xlu0 %185 }
  0xae   :  { %v1938_v46 = vpop.permute.xlu1 %190 }
  0xb1   :  { %v106_v47 = vpop.permute.xlu0 %105 }
  0xb2   :  { %v111_v48 = vpop.permute.xlu1 %110 }
  0xb5   :  { %v1940_v49 = vpop.permute.xlu0 %175 }
  0xb6   :  { %v1942_v50 = vpop.permute.xlu1 %180 }
  0xb9   :  { %v96_v54 = vpop.permute.xlu0 %95 }
  0xba   :  { %v101_v58 = vpop.permute.xlu1 %100 }
  0xc6   :  { %v1471_v51 = vpop.f32.mrf.mxu0 }
  0xc7   :  { %v431_v53 = vadd.f32 %v1471_v51, %v106_v47 }
  0xc8   :  { %v422_v52 = vpop.f32.mrf.mxu0 }
  0xc9   :  { %v423_v56 = vadd.f32 %v422_v52, %v96_v54  ;;  %v551_v60 = vmax.f32 %v431_v53, 0.0 }
  0xca   :  { %v1472_v55 = vpop.f32.mrf.mxu0 }
  0xcb   :  { %v434_v57 = vadd.f32 %v1472_v55, %v111_v48  ;;  %v549_v0 = vmax.f32 %v423_v56, 0.0 }
  0xcc   :  { %v425_v59 = vpop.f32.mrf.mxu0 }
  0xcd   :  { %v552_v61 = vmax.f32 %v434_v57, 0.0  ;;  %v426_v62 = vadd.f32 %v425_v59, %v101_v58 }
  0xce   :  { %v1475_v63 = vpop.f32.mrf.mxu0 }
  0xcf   :  { %v1944_v1 = vpack.c.bf16 %v552_v61, %v551_v60  ;;  %v550_v2 = vmax.f32 %v426_v62, 0.0  ;;  %v447_v5 = vadd.f32 %v1475_v63, %v126_v37 }
  0xd0   :  { %v438_v3 = vpop.f32.mrf.mxu0 }
  0xd1   :  { %v1946_v4 = vpack.c.bf16 %v550_v2, %v549_v0  ;;  %v439_v7 = vadd.f32 %v438_v3, %v116_v43  ;;  %v555_v10 = vmax.f32 %v447_v5, 0.0 }
  0xd2   :  { %v1476_v6 = vpop.f32.mrf.mxu0 }
  0xd3   :  { %v450_v8 = vadd.f32 %v1476_v6, %v131_v39  ;;  %v553_v14 = vmax.f32 %v439_v7, 0.0 }
  0xd4   :  { %v441_v9 = vpop.f32.mrf.mxu0 }
  0xd5   :  { %v556_v11 = vmax.f32 %v450_v8, 0.0  ;;  %v442_v12 = vadd.f32 %v441_v9, %v121_v44 }
  0xd6   :  { %v1479_v13 = vpop.f32.mrf.mxu0 }
  0xd7   :  { %v1948_v15 = vpack.c.bf16 %v556_v11, %v555_v10  ;;  %v554_v16 = vmax.f32 %v442_v12, 0.0 }
  0xd8   :  { %v1950_v17 = vpop.f32.mrf.mxu0 }
  0xd9   :  { %v1952_v20 = vpack.c.bf16 %v554_v16, %v553_v14 }
  0xda   :  { %v1480_v38 = vpop.f32.mrf.mxu0 }
  0xdc   :  { %v457_v40 = vpop.f32.mrf.mxu0 }
  0xde   :  { %v1483_v47 = vpop.f32.mrf.mxu0 }
  0xdf   :  { %v479_v2 = vadd.f32 %v1483_v47, %v1889_v19 }
  0xe0   :  { %v470_v37 = vpop.f32.mrf.mxu0 }
  0xe1   :  { %v563_v14 = vmax.f32 %v479_v2, 0.0 }
  0xe2   :  { %v1484_v48 = vpop.f32.mrf.mxu0 }
  0xe3   :  { %v482_v62 = vadd.f32 %v1484_v48, %v1896_v22 }
  0xe4   :  { %v473_v43 = vpop.f32.mrf.mxu0 }
  0xe5   :  { %v564_v7 = vmax.f32 %v482_v62, 0.0  ;;  %v474_v8 = vadd.f32 %v473_v43, %v1902_v25 }
  0xe6   :  { %v1954_v39 = vpop.f32.mrf.mxu0 }
  0xe7   :  { %v588_v48 = vpack.c.bf16 %v564_v7, %v563_v14  ;;  %v1553_v7 = vld [vmem:[%s2232_s3 + $0x20] ss:$8 sps:$4 sm:$0xff]   ;;  %v1563_v14 = vld [vmem:[%s2232_s3 + $0x94] ss:$8 sps:$4 sm:$0xff]  }
  0xe8   :  { %v1956_v51 = vpop.f32.mrf.mxu0 }
  0xea   :  { %v1958_v44 = vpop.f32.mrf.mxu0 }
  0xec   :  { %v1960_v52 = vpop.f32.mrf.mxu0 }
  0xee   :  { %v1491_v53 = vpop.f32.mrf.mxu0 }
  0xf0   :  { %v1962_v54 = vpop.f32.mrf.mxu0 }
  0xf2   :  { %v1492_v55 = vpop.f32.mrf.mxu0 }
  0xf4   :  { %v505_v56 = vpop.f32.mrf.mxu0 }
  0xf6   :  { %v1495_v57 = vpop.f32.mrf.mxu0 }
  0xf7   :  { %v527_v19 = vadd.f32 %v1495_v57, %v1908_v28  ;;  %v514_v57 = vadd.f32 %v1492_v55, %v1924_v36 }
  0xf8   :  { %v518_v58 = vpop.f32.mrf.mxu0 }
  0xf9   :  { %v519_v28 = vadd.f32 %v518_v58, %v1914_v31 }
  0xfa   :  { %v1496_v59 = vpop.f32.mrf.mxu0 }
  0xfb   :  { %v530_v10 = vadd.f32 %v1496_v59, %v1906_v27 }
  0xfc   :  { %v521_v60 = vpop.f32.mrf.mxu0 }
  0xfd   :  { %v576_v25 = vmax.f32 %v530_v10, 0.0  ;;  %v522_v43 = vadd.f32 %v521_v60, %v1916_v32  ;;  %v1557_v10 = vld [vmem:[%s2232_s3 + $0x84] ss:$8 sps:$4 sm:$0xff]  }
  0xfe   :  { %v1499_v61 = vpop.f32.mrf.mxu0 }
  0xff   :  { %v543_v0 = vadd.f32 %v1499_v61, %v1887_v18  ;;  %v471_v18 = vadd.f32 %v470_v37, %v1904_v26  ;;  %v562_v61 = vmax.f32 %v474_v8, 0.0  ;;  %v575_v26 = vmax.f32 %v527_v19, 0.0  ;;  %v1554_v8 = vld [vmem:[%s2232_s3 + $0x70] ss:$8 sps:$4 sm:$0xff]  }
 0x100   :  { %v534_v63 = vpop.f32.mrf.mxu0  ;;  %v574_v60 = vmax.f32 %v522_v43, 0.0  ;;  %v1566_v19 = vld [vmem:[%s2232_s3 + $0x90] ss:$8 sps:$4 sm:$0xff]  }
 0x101   :  { %v535_v5 = vadd.f32 %v534_v63, %v1898_v23  ;;  %v579_v11 = vmax.f32 %v543_v0, 0.0  ;;  %v561_v59 = vmax.f32 %v471_v18, 0.0  ;;  %v594_v32 = vpack.c.bf16 %v576_v25, %v575_v26  ;;  %v1565_v18 = vld [vmem:[%s2232_s3 + $0x40] ss:$8 sps:$4 sm:$0xff]   ;;  %v1576_v25 = vld [vmem:[%s2232_s3 + $0xd4] ss:$8 sps:$4 sm:$0xff]  }
 0x102   :  { %v1500_v3 = vpop.f32.mrf.mxu0  ;;  %v573_v63 = vmax.f32 %v519_v28, 0.0  ;;  %v572_v0 = vmax.f32 %v514_v57, 0.0  ;;  %v1578_v43 = vld [vmem:[%s2232_s3 + $0xd0] ss:$8 sps:$4 sm:$0xff]   ;;  %v2092_v28 = vpop.permute.xlu0 %813 }
 0x103   :  { %v546_v6 = vadd.f32 %v1500_v3, %v1894_v21  ;;  %v577_v16 = vmax.f32 %v535_v5, 0.0  ;;  %v466_v21 = vadd.f32 %v1480_v38, %v1912_v30  ;;  %v458_v30 = vadd.f32 %v457_v40, %v1920_v34  ;;  %v1584_v26 = vld [vmem:[%s2232_s3 + $0xf0] ss:$8 sps:$4 sm:$0xff]  }
 0x104   :  { %v537_v9 = vpop.f32.mrf.mxu0  ;;  %v587_v38 = vpack.c.bf16 %v562_v61, %v561_v59  ;;  %v506_v34 = vadd.f32 %v505_v56, %v1934_v42  ;;  %v593_v40 = vpack.c.bf16 %v574_v60, %v573_v63  ;;  %v495_v42 = vadd.f32 %v1954_v39, %v1936_v45  ;;  %v1575_v61 = vld [vmem:[%s2232_s3 + $0xc0] ss:$8 sps:$4 sm:$0xff]   ;;  %v1582_v59 = vld [vmem:[%s2232_s3 + $0xf4] ss:$8 sps:$4 sm:$0xff]  }
 0x105   :  { %v580_v12 = vmax.f32 %v546_v6, 0.0  ;;  %v538_v22 = vadd.f32 %v537_v9, %v1900_v24  ;;  %v463_v24 = vadd.f32 %v1479_v13, %v1910_v29  ;;  %v560_v37 = vmax.f32 %v466_v21, 0.0  ;;  %v1551_v6 = vld [vmem:[%s2232_s3 + $0x74] ss:$8 sps:$4 sm:$0xff]   ;;  %v1572_v21 = vld [vmem:[%s2232_s3 + $0xb0] ss:$8 sps:$4 sm:$0xff]  }
 0x106   :  { %v455_v29 = vadd.f32 %v1950_v17, %v1918_v33  ;;  %v511_v13 = vadd.f32 %v1491_v53, %v1922_v35  ;;  %v558_v58 = vmax.f32 %v458_v30, 0.0  ;;  %v503_v33 = vadd.f32 %v1962_v54, %v1932_v41  ;;  %v1555_v9 = vld [vmem:[%s2232_s3 + $0x34] ss:$8 sps:$4 sm:$0xff]   ;;  %v734_v30 = vpop.permute.xlu0 %733 }
 0x107   :  { %v596_v47 = vpack.c.bf16 %v580_v12, %v579_v11  ;;  %v578_v23 = vmax.f32 %v538_v22, 0.0  ;;  %v559_v62 = vmax.f32 %v463_v24, 0.0  ;;  %v498_v35 = vadd.f32 %v1958_v44, %v1938_v46  ;;  %v1559_v11 = vld [vmem:[%s2232_s3 + $0x30] ss:$8 sps:$4 sm:$0xff]   ;;  %v1560_v12 = vld [vmem:[%s2232_s3 + $0x80] ss:$8 sps:$4 sm:$0xff]  }
 0x108   :  { %v557_v36 = vmax.f32 %v455_v29, 0.0  ;;  %v571_v55 = vmax.f32 %v511_v13, 0.0  ;;  %v570_v2 = vmax.f32 %v506_v34, 0.0  ;;  %v569_v56 = vmax.f32 %v503_v33, 0.0  ;;  %v1561_v22 = vld [vmem:[%s2232_s3 + $0x44] ss:$8 sps:$4 sm:$0xff]  }
 0x109   :  { %v595_v27 = vpack.c.bf16 %v578_v23, %v577_v16  ;;  %1333 = vmatprep.subr.bf16.mxu0 %v596_v47  ;;  %1501 = vmatprep.subr.bf16.mxu1 %v596_v47  ;;  %v586_v31 = vpack.c.bf16 %v560_v37, %v559_v62  ;;  %v568_v3 = vmax.f32 %v498_v35, 0.0  ;;  %v490_v41 = vadd.f32 %v1960_v52, %v1942_v50  ;;  %v1549_v52 = vld [vmem:[%s2232_s3 + $0x24] ss:$8 sps:$4 sm:$0xff]   ;;  %v1569_v47 = vld [vmem:[%s2232_s3 + $0xa0] ss:$8 sps:$4 sm:$0xff]   ;;  %v2094_v37 = vpop.permute.xlu1 %818 }
 0x10a   :  { %1334 = vmatpush3.bf16.msra.mxu0 %v588_v48  ;;  %1509 = vmatpush3.bf16.msra.mxu1 %v588_v48  ;;  %v585_v17 = vpack.c.bf16 %v558_v58, %v557_v36  ;;  %v592_v53 = vpack.c.bf16 %v572_v0, %v571_v55  ;;  %v591_v54 = vpack.c.bf16 %v570_v2, %v569_v56  ;;  %v567_v46 = vmax.f32 %v495_v42, 0.0  ;;  %v1567_v16 = vld [vmem:[%s2232_s3 + $0xa4] ss:$8 sps:$4 sm:$0xff]   ;;  %v1570_v23 = vld [vmem:[%s2232_s3 + $0xb4] ss:$8 sps:$4 sm:$0xff]   ;;  %v2096_v57 = vpop.permute.xlu0 %803 }
 0x10b   :  { %1335 = vmatprep.subr.bf16.mxu0 %v595_v27  ;;  %1502 = vmatprep.subr.bf16.mxu1 %v595_v27  ;;  %v487_v44 = vadd.f32 %v1956_v51, %v1940_v49  ;;  %v566_v45 = vmax.f32 %v490_v41, 0.0  ;;  %v1537_v49 = vld [vmem:[%s2232_s3] ss:$8 sps:$4 sm:$0xff]   ;;  %v1547_v51 = vld [vmem:[%s2232_s3 + $0x10] ss:$8 sps:$4 sm:$0xff]  }
 0x10c   :  { %v590_v5 = vpack.c.bf16 %v568_v3, %v567_v46  ;;  %v1573_v48 = vld [vmem:[%s2232_s3 + $0xc4] ss:$8 sps:$4 sm:$0xff]   ;;  %v1581_v24 = vld [vmem:[%s2232_s3 + $0xe0] ss:$8 sps:$4 sm:$0xff]  }
 0x10d   :  { %v565_v39 = vmax.f32 %v487_v44, 0.0  ;;  %v1579_v27 = vld [vmem:[%s2232_s3 + $0xe4] ss:$8 sps:$4 sm:$0xff]  }
 0x10e   :  { %1336 = vmatpush3.bf16.msra.mxu0 %v587_v38  ;;  %1510 = vmatpush3.bf16.msra.mxu1 %v587_v38  ;;  %v739_v38 = vpop.permute.xlu1 %738  ;;  %v724_v60 = vpop.permute.xlu0 %723  ;;  %v2117_v55 = vld [vmem:[%s2233_s5] sm:$0xff] }
 0x10f   :  { %1337 = vmatprep.subr.bf16.mxu0 %v594_v32  ;;  %1503 = vmatprep.subr.bf16.mxu1 %v594_v32  ;;  %v589_v50 = vpack.c.bf16 %v566_v45, %v565_v39  ;;  %2236 = vst [vmem:[#allocation2_spill] sm:$0xff] %v2117_v55 }
 0x112   :  { %1338 = vmatpush3.bf16.msra.mxu0 %v586_v31  ;;  %1511 = vmatpush3.bf16.msra.mxu1 %v586_v31  ;;  %v2098_v32 = vpop.permute.xlu1 %808  ;;  %v2100_v29 = vpop.permute.xlu0 %793 }
 0x113   :  { %1339 = vmatprep.subr.bf16.mxu0 %v593_v40  ;;  %1504 = vmatprep.subr.bf16.mxu1 %v593_v40 }
 0x116   :  { %1340 = vmatpush3.bf16.msra.mxu0 %v585_v17  ;;  %1512 = vmatpush3.bf16.msra.mxu1 %v585_v17  ;;  %v729_v62 = vpop.permute.xlu1 %728  ;;  %v714_v63 = vpop.permute.xlu0 %713  ;;  %v1315_v17 = vcombine.high %v2117_v55, %v2117_v55 }
 0x117   :  { %1341 = vmatprep.subr.bf16.mxu0 %v592_v53  ;;  %1505 = vmatprep.subr.bf16.mxu1 %v592_v53 }
 0x11a   :  { %1342 = vmatpush3.bf16.msra.mxu0 %v1948_v15  ;;  %1513 = vmatpush3.bf16.msra.mxu1 %v1948_v15  ;;  %v1540_v15 = vld [vmem:[%s2232_s3 + $0x50] ss:$8 sps:$4 sm:$0xff]   ;;  %v2102_v13 = vpop.permute.xlu1 %798  ;;  %v2104_v58 = vpop.permute.xlu0 %783 }
 0x11b   :  { %1343 = vmatprep.subr.bf16.mxu0 %v591_v54  ;;  %1506 = vmatprep.subr.bf16.mxu1 %v591_v54 }
 0x11e   :  { %1344 = vmatpush3.bf16.msra.mxu0 %v1952_v20  ;;  %1514 = vmatpush3.bf16.msra.mxu1 %v1952_v20  ;;  %v1543_v20 = vld [vmem:[%s2232_s3 + $0x14] ss:$8 sps:$4 sm:$0xff]   ;;  %v719_v31 = vpop.permute.xlu1 %718  ;;  %v2108_v34 = vpop.permute.xlu0 %703 }
 0x11f   :  { %1345 = vmatprep.subr.bf16.mxu0 %v590_v5  ;;  %1507 = vmatprep.subr.bf16.mxu1 %v590_v5 }
 0x122   :  { %1346 = vmatpush3.bf16.msra.mxu0 %v1944_v1  ;;  %1515 = vmatpush3.bf16.msra.mxu1 %v1944_v1  ;;  %v1545_v1 = vld [vmem:[%s2232_s3 + $0x64] ss:$8 sps:$4 sm:$0xff]   ;;  %v2106_v0 = vpop.permute.xlu1 %788  ;;  %v2112_v36 = vpop.permute.xlu0 %773 }
 0x123   :  { %1347 = vmatprep.subr.bf16.mxu0 %v589_v50  ;;  %1508 = vmatprep.subr.bf16.mxu1 %v589_v50 }
 0x126   :  { %1348 = vmatpush3.bf16.msra.mxu0 %v1946_v4  ;;  %1516 = vmatpush3.bf16.msra.mxu1 %v1946_v4  ;;  %v1548_v4 = vld [vmem:[%s2232_s3 + $0x60] ss:$8 sps:$4 sm:$0xff]   ;;  %v2110_v40 = vpop.permute.xlu1 %708  ;;  %v2123_v35 = vpop.permute.xlu0 %693 }
 0x129   :  { %1014 = vmatmul.mubr.bf16.vlgmr.msra.gmra.mxu0 %v1537_v49  ;;  %1054 = vmatmul.mubr.bf16.vlgmr.msra.gmra.mxu1 %v1540_v15 }
 0x12a   :  { %1021 = vmatprep.mubr.bf16.mxu0 %v1543_v20  ;;  %1061 = vmatprep.mubr.bf16.mxu1 %v1545_v1  ;;  %v2119_v33 = vpop.permute.xlu1 %778  ;;  %v2127_v41 = vpop.permute.xlu0 %763 }
 0x12b   :  { %2237 = vst [vmem:[#allocation3_spill] sm:$0xff] %v2127_v41 }
 0x12e   :  { %v2125_v2 = vpop.permute.xlu1 %698  ;;  %v2131_v1 = vpop.permute.xlu0 %683 }
 0x12f   :  { %2238 = vst [vmem:[#allocation4_spill] sm:$0xff] %v2131_v1 }
 0x131   :  { %1022 = vmatmul.mubr.bf16.gmra.mxu0 %v1547_v51  ;;  %1062 = vmatmul.mubr.bf16.gmra.mxu1 %v1548_v4 }
 0x132   :  { %1029 = vmatprep.mubr.bf16.mxu0 %v1549_v52  ;;  %1069 = vmatprep.mubr.bf16.mxu1 %v1551_v6  ;;  %v2129_v5 = vpop.permute.xlu1 %768 }
 0x136   :  { %v2135_v52 = vpop.permute.xlu1 %688 }
 0x137   :  { %2240 = vst [vmem:[#allocation6_spill] sm:$0xff] %v2135_v52 }
 0x139   :  { %1030 = vmatmul.mubr.bf16.gmra.mxu0 %v1553_v7  ;;  %1070 = vmatmul.mubr.bf16.gmra.mxu1 %v1554_v8 }
 0x13a   :  { %1037 = vmatprep.mubr.bf16.mxu0 %v1555_v9  ;;  %1077 = vmatprep.mubr.bf16.mxu1 %v1557_v10 }
 0x141   :  { %1038 = vmatmul.mubr.bf16.gmra.mxu0 %v1559_v11  ;;  %1078 = vmatmul.mubr.bf16.gmra.mxu1 %v1560_v12  ;;  %v754_v12 = vpop.permute.xlu0 %753 }
 0x142   :  { %1045 = vmatprep.mubr.bf16.mxu0 %v1561_v22  ;;  %1085 = vmatprep.mubr.bf16.mxu1 %v1563_v14 }
 0x149   :  { %1046 = vmatmul.mubr.bf16.gmra.mxu0 %v1565_v18  ;;  %1086 = vmatmul.mubr.bf16.gmra.mxu1 %v1566_v19 }
 0x14a   :  { %1093 = vmatprep.mubr.bf16.mxu1 %v1567_v16  ;;  %1236 = vmatprep.mubr.bf16.mxu0 %v1315_v17 }
 0x151   :  { %1094 = vmatmul.mubr.bf16.gmra.mxu1 %v1569_v47  ;;  %v759_v47 = vpop.permute.xlu1 %758 }
 0x152   :  { %1101 = vmatprep.mubr.bf16.mxu1 %v1570_v23 }
 0x159   :  { %1102 = vmatmul.mubr.bf16.gmra.mxu1 %v1572_v21 }
 0x15a   :  { %1109 = vmatprep.mubr.bf16.mxu1 %v1573_v48 }
 0x161   :  { %1110 = vmatmul.mubr.bf16.gmra.mxu1 %v1575_v61 }
 0x162   :  { %1117 = vmatprep.mubr.bf16.mxu1 %v1576_v25 }
 0x169   :  { %1118 = vmatmul.mubr.bf16.gmra.mxu1 %v1578_v43 }
 0x16a   :  { %1125 = vmatprep.mubr.bf16.mxu1 %v1579_v27  ;;  %v2145_v27 = vpop.permute.xlu0 %673 }
 0x16b   :  { %2244 = vst [vmem:[#allocation10_spill] sm:$0xff] %v2145_v27 }
 0x171   :  { %1126 = vmatmul.mubr.bf16.gmra.mxu1 %v1581_v24 }
 0x172   :  { %1133 = vmatprep.mubr.bf16.mxu1 %v1582_v59 }
 0x179   :  { %1134 = vmatmul.mubr.bf16.gmra.mxu1 %v1584_v26  ;;  %v2147_v26 = vpop.permute.xlu1 %678 }
 0x17a   :  { %2245 = vst [vmem:[#allocation11_spill] sm:$0xff] %v2147_v26 }
 0x1e9   :  { %v1379_v53 = vpop.f32.mrf.mxu1  ;;  %v2137_v7 = vpop.f32.mrf.mxu0 }
 0x1ea   :  { %2241 = vst [vmem:[#allocation7_spill] sm:$0xff] %v2137_v7 }
 0x1eb   :  { %v1380_v42 = vpop.f32.mrf.mxu1  ;;  %v2139_v14 = vpop.f32.mrf.mxu0 }
 0x1ec   :  { %v1381_v56 = vadd.f32 %v1380_v42, %v1379_v53  ;;  %2242 = vst [vmem:[#allocation8_spill] sm:$0xff] %v2139_v14 }
 0x1ed   :  { %v1382_v3 = vpop.f32.mrf.mxu1  ;;  %v2143_v61 = vpop.f32.mrf.mxu0 }
 0x1ee   :  { %v1056_v46 = vadd.f32 %v1381_v56, %v714_v63  ;;  %2243 = vst [vmem:[#allocation9_spill] sm:$0xff] %v2143_v61  ;;  %v744_v56 = vpop.permute.xlu0 %743 }
 0x1ef   :  { %v1383_v54 = vpop.f32.mrf.mxu1 }
 0x1f0   :  { %v1384_v44 = vadd.f32 %v1383_v54, %v1382_v3  ;;  %v1152_v49 = vmax.f32 %v1056_v46, 0.0 }
 0x1f1   :  { %v1385_v45 = vpop.f32.mrf.mxu1 }
 0x1f2   :  { %v1059_v39 = vadd.f32 %v1384_v44, %v719_v31  ;;  %v749_v44 = vpop.permute.xlu1 %748 }
 0x1f3   :  { %v1386_v50 = vpop.f32.mrf.mxu1 }
 0x1f4   :  { %v1153_v15 = vmax.f32 %v1059_v39, 0.0  ;;  %v1387_v20 = vadd.f32 %v1386_v50, %v1385_v45 }
 0x1f5   :  { %v1388_v51 = vpop.f32.mrf.mxu1 }
 0x1f6   :  { %v2133_v4 = vpack.c.bf16 %v1153_v15, %v1152_v49  ;;  %v1064_v8 = vadd.f32 %v1387_v20, %v724_v60 }
 0x1f7   :  { %v1389_v6 = vpop.f32.mrf.mxu1 }
 0x1f8   :  { %2239 = vst [vmem:[#allocation5_spill] sm:$0xff] %v2133_v4  ;;  %v1390_v9 = vadd.f32 %v1389_v6, %v1388_v51  ;;  %v1154_v18 = vmax.f32 %v1064_v8, 0.0 }
 0x1f9   :  { %v1391_v10 = vpop.f32.mrf.mxu1 }
 0x1fa   :  { %v1067_v11 = vadd.f32 %v1390_v9, %v729_v62  ;;  %v2149_v62 = vpop.f32.mrf.mxu0 }
 0x1fb   :  { %v1392_v22 = vpop.f32.mrf.mxu1  ;;  %2246 = vst [vmem:[#allocation12_spill] sm:$0xff] %v2149_v62 }
 0x1fc   :  { %v1155_v19 = vmax.f32 %v1067_v11, 0.0  ;;  %v1393_v16 = vadd.f32 %v1392_v22, %v1391_v10  ;;  %v2153_v54 = vpop.f32.mrf.mxu0 }
 0x1fd   :  { %v1394_v23 = vpop.f32.mrf.mxu1  ;;  %2247 = vst [vmem:[#allocation13_spill] sm:$0xff] %v2153_v54 }
 0x1fe   :  { %v2141_v21 = vpack.c.bf16 %v1155_v19, %v1154_v18  ;;  %v1072_v25 = vadd.f32 %v1393_v16, %v734_v30  ;;  %v2155_v50 = vpop.f32.mrf.mxu0 }
 0x1ff   :  { %v1395_v48 = vpop.f32.mrf.mxu1  ;;  %2248 = vst [vmem:[#allocation14_spill] sm:$0xff] %v2155_v50 }
 0x200   :  { %v1396_v43 = vadd.f32 %v1395_v48, %v1394_v23  ;;  %v1156_v63 = vmax.f32 %v1072_v25, 0.0  ;;  %v2159_v9 = vpop.f32.mrf.mxu0 }
 0x201   :  { %v1397_v24 = vpop.f32.mrf.mxu1  ;;  %2250 = vst [vmem:[#allocation16_spill] sm:$0xff] %v2159_v9 }
 0x202   :  { %v1075_v59 = vadd.f32 %v1396_v43, %v739_v38  ;;  %v2165_v16 = vpop.f32.mrf.mxu0 }
 0x203   :  { %v1398_v60 = vpop.f32.mrf.mxu1  ;;  %2251 = vst [vmem:[#allocation17_spill] sm:$0xff] %v2165_v16 }
 0x204   :  { %v1157_v31 = vmax.f32 %v1075_v59, 0.0  ;;  %v1399_v17 = vadd.f32 %v1398_v60, %v1397_v24  ;;  %v2173_v59 = vpop.f32.mrf.mxu0 }
 0x205   :  { %v1400_v53 = vpop.f32.mrf.mxu1 }
 0x206   :  { %v2151_v42 = vpack.c.bf16 %v1157_v31, %v1156_v63  ;;  %v1080_v30 = vadd.f32 %v1399_v17, %v744_v56  ;;  %v2175_v63 = vpop.f32.mrf.mxu0 }
 0x207   :  { %v1401_v3 = vpop.f32.mrf.mxu1 }
 0x208   :  { %v1402_v46 = vadd.f32 %v1401_v3, %v1400_v53  ;;  %v1158_v49 = vmax.f32 %v1080_v30, 0.0  ;;  %v2177_v17 = vpop.f32.mrf.mxu0 }
 0x209   :  { %v1403_v45 = vpop.f32.mrf.mxu1 }
 0x20a   :  { %v1083_v38 = vadd.f32 %v1402_v46, %v749_v44  ;;  %v2179_v3 = vpop.f32.mrf.mxu0 }
 0x20b   :  { %v1404_v39 = vpop.f32.mrf.mxu1 }
 0x20c   :  { %v1159_v15 = vmax.f32 %v1083_v38, 0.0  ;;  %v1405_v20 = vadd.f32 %v1404_v39, %v1403_v45  ;;  %v1367_v44 = vpop.f32.mrf.mxu0 }
 0x20d   :  { %v1406_v51 = vpop.f32.mrf.mxu1 }
 0x20e   :  { %v2157_v6 = vpack.c.bf16 %v1159_v15, %v1158_v49  ;;  %v1088_v10 = vadd.f32 %v1405_v20, %v754_v12  ;;  %v1368_v39 = vpop.f32.mrf.mxu0 }
 0x20f   :  { %v1407_v8 = vpop.f32.mrf.mxu1 }
 0x210   :  { %2249 = vst [vmem:[#allocation15_spill] sm:$0xff] %v2157_v6  ;;  %v1408_v11 = vadd.f32 %v1407_v8, %v1406_v51  ;;  %v1160_v23 = vmax.f32 %v1088_v10, 0.0  ;;  %v1370_v20 = vpop.f32.mrf.mxu0 }
 0x211   :  { %v2161_v22 = vpop.f32.mrf.mxu1 }
 0x212   :  { %v1091_v18 = vadd.f32 %v1408_v11, %v759_v47  ;;  %v1371_v10 = vpop.f32.mrf.mxu0 }
 0x213   :  { %v2163_v19 = vpop.f32.mrf.mxu1 }
 0x214   :  { %v1161_v48 = vmax.f32 %v1091_v18, 0.0 }
 0x215   :  { %v2167_v25 = vpop.f32.mrf.mxu1 }
 0x216   :  { %v2169_v43 = vpack.c.bf16 %v1161_v48, %v1160_v23  ;;  %v1373_v23 = vpop.f32.mrf.mxu0 }
 0x217   :  { %v2171_v24 = vpop.f32.mrf.mxu1 }
 0x218   :  { %2252 = vst [vmem:[#allocation18_spill] sm:$0xff] %v2169_v43  ;;  %v1374_v6 = vpop.f32.mrf.mxu0 }
 0x219   :  { %v1415_v60 = vpop.f32.mrf.mxu1 }
 0x21a   :  { %v1376_v62 = vpop.f32.mrf.mxu0 }
 0x21b   :  { %v1416_v12 = vpop.f32.mrf.mxu1 }
 0x21c   :  { %v1377_v4 = vpop.f32.mrf.mxu0 }
 0x21d   :  { %v1418_v31 = vpop.f32.mrf.mxu1 }
 0x21f   :  { %v1419_v47 = vpop.f32.mrf.mxu1 }
 0x221   :  { %v1421_v53 = vpop.f32.mrf.mxu1 }
 0x223   :  { %v1422_v56 = vpop.f32.mrf.mxu1 }
 0x225   :  { %v1424_v30 = vpop.f32.mrf.mxu1 }
 0x227   :  { %v1425_v46 = vpop.f32.mrf.mxu1 }
 0x228   :  { %v1426_v41 = vadd.f32 %v1425_v46, %v1424_v30 }
 0x229   :  { %v1427_v45 = vpop.f32.mrf.mxu1 }
 0x22b   :  { %v1428_v38 = vpop.f32.mrf.mxu1 }
 0x22c   :  { %v1429_v52 = vadd.f32 %v1428_v38, %v1427_v45  ;;  %v2261_v45 = vld [vmem:[#allocation9_spill] sm:$0xff]  ;;  %v2262_v38 = vld [vmem:[#allocation12_spill] sm:$0xff] }
 0x22d   :  { %v1430_v49 = vpop.f32.mrf.mxu1 }
 0x22f   :  { %v1431_v15 = vpop.f32.mrf.mxu1 }
 0x230   :  { %v1432_v61 = vadd.f32 %v1431_v15, %v1430_v49  ;;  %v1120_v49 = vadd.f32 %v1429_v52, %v2100_v29 }
 0x231   :  { %v1433_v51 = vpop.f32.mrf.mxu1 }
 0x233   :  { %v1434_v8 = vpop.f32.mrf.mxu1 }
 0x234   :  { %v1435_v7 = vadd.f32 %v1434_v8, %v1433_v51  ;;  %v1423_v8 = vadd.f32 %v1422_v56, %v1421_v53 }
 0x235   :  { %v1436_v11 = vpop.f32.mrf.mxu1 }
 0x236   :  { %v1128_v16 = vadd.f32 %v1435_v7, %v2096_v57  ;;  %v1417_v7 = vadd.f32 %v1416_v12, %v1415_v60  ;;  %v2255_v60 = vld [vmem:[#allocation16_spill] sm:$0xff]  ;;  %v2256_v12 = vld [vmem:[#allocation17_spill] sm:$0xff] }
 0x237   :  { %v1437_v18 = vpop.f32.mrf.mxu1 }
 0x238   :  { %v1438_v43 = vadd.f32 %v1437_v18, %v1436_v11  ;;  %v1123_v11 = vadd.f32 %v1432_v61, %v2102_v13  ;;  %v1170_v15 = vmax.f32 %v1128_v16, 0.0  ;;  %v1112_v13 = vadd.f32 %v1423_v8, %v2104_v58  ;;  %v2266_v8 = vld [vmem:[#allocation10_spill] sm:$0xff] }
 0x239   :  { %v1439_v48 = vpop.f32.mrf.mxu1  ;;  %v1372_v61 = vadd.f32 %v1371_v10, %v1370_v20  ;;  %v1411_v58 = vadd.f32 %v2163_v19, %v2161_v22  ;;  %v2253_v19 = vld [vmem:[#allocation5_spill] sm:$0xff]  ;;  %v2263_v20 = vld [vmem:[#allocation11_spill] sm:$0xff] }
 0x23a   :  { %v1131_v1 = vadd.f32 %v1438_v43, %v2098_v32  ;;  %v1378_v43 = vadd.f32 %v1377_v4, %v1376_v62  ;;  %v1414_v4 = vadd.f32 %v2171_v24, %v2167_v25 }
 0x23b   :  { %v1440_v55 = vpop.f32.mrf.mxu1 }
 0x23c   :  { %v1441_v27 = vadd.f32 %v1440_v55, %v1439_v48  ;;  %v1171_v55 = vmax.f32 %v1131_v1, 0.0  ;;  %v1168_v1 = vmax.f32 %v1120_v49, 0.0  ;;  %v1051_v29 = vadd.f32 %v1378_v43, %v2110_v40 }
 0x23d   :  { %v1442_v14 = vpop.f32.mrf.mxu1  ;;  %v1366_v40 = vadd.f32 %v2179_v3, %v2177_v17  ;;  %v2258_v3 = vld [vmem:[#allocation13_spill] sm:$0xff] }
 0x23e   :  { %v1136_v50 = vadd.f32 %v1441_v27, %v2092_v28  ;;  %v1420_v28 = vadd.f32 %v1419_v47, %v1418_v31  ;;  %v1169_v27 = vmax.f32 %v1123_v11, 0.0  ;;  %v1188_v57 = vpack.c.bf16 %v1171_v55, %v1170_v15  ;;  %v2257_v31 = vld [vmem:[#allocation6_spill] sm:$0xff]  ;;  %v2264_v55 = vld [vmem:[#allocation7_spill] sm:$0xff] }
 0x23f   :  { %v1443_v26 = vpop.f32.mrf.mxu1  ;;  %v1035_v47 = vadd.f32 %v1366_v40, %v2257_v31 }
 0x240   :  { %v1444_v54 = vadd.f32 %v1443_v26, %v1442_v14  ;;  %v1172_v18 = vmax.f32 %v1136_v50, 0.0  ;;  %v1115_v14 = vadd.f32 %v1426_v41, %v2106_v0  ;;  %v1107_v52 = vadd.f32 %v1420_v28, %v2119_v33 }
 0x241   :  { %v1187_v41 = vpack.c.bf16 %v1169_v27, %v1168_v1  ;;  %v1369_v26 = vadd.f32 %v1368_v39, %v1367_v44  ;;  %v1043_v50 = vadd.f32 %v1372_v61, %v2125_v2  ;;  %v1151_v33 = vmax.f32 %v1051_v29, 0.0  ;;  %v664_v27 = vpop.permute.xlu0 %663  ;;  %v2268_v29 = vld [vmem:[#allocation15_spill] sm:$0xff] }
 0x242   :  { %v1139_v9 = vadd.f32 %v1444_v54, %v2094_v37  ;;  %v1375_v37 = vadd.f32 %v1374_v6, %v1373_v23  ;;  %v1167_v0 = vmax.f32 %v1115_v14, 0.0  ;;  %v1166_v54 = vmax.f32 %v1112_v13, 0.0 }
 0x243   :  { %v1099_v6 = vadd.f32 %v1414_v4, %v2129_v5  ;;  %v1360_v2 = vadd.f32 %v2256_v12, %v2255_v60  ;;  %v1149_v5 = vmax.f32 %v1043_v50, 0.0  ;;  %v1354_v39 = vadd.f32 %v2262_v38, %v2261_v45 }
 0x244   :  { %v1173_v51 = vmax.f32 %v1139_v9, 0.0  ;;  %v1048_v62 = vadd.f32 %v1375_v37, %v2108_v34  ;;  %v1165_v9 = vmax.f32 %v1107_v52, 0.0  ;;  %v1186_v16 = vpack.c.bf16 %v1167_v0, %v1166_v54  ;;  %v2269_v52 = vld [vmem:[#allocation2_spill] sm:$0xff] }
 0x245   :  { %v1363_v34 = vadd.f32 %v2175_v63, %v2173_v59  ;;  %v1163_v53 = vmax.f32 %v1099_v6, 0.0  ;;  %v2259_v59 = vld [vmem:[#allocation14_spill] sm:$0xff]  ;;  %v1027_v10 = vadd.f32 %v1360_v2, %v2263_v20  ;;  %v1147_v23 = vmax.f32 %v1035_v47, 0.0 }
 0x246   :  { %v1189_v32 = vpack.c.bf16 %v1173_v51, %v1172_v18  ;;  %v1150_v22 = vmax.f32 %v1048_v62, 0.0  ;;  %v1357_v63 = vadd.f32 %v2259_v59, %v2258_v3  ;;  %v2265_v18 = vld [vmem:[#allocation8_spill] sm:$0xff]  ;;  %v1314_v0 = vcombine.low %v2269_v52, %v2269_v52 }
 0x247   :  { %v1351_v51 = vadd.f32 %v2265_v18, %v2264_v55  ;;  %v1145_v28 = vmax.f32 %v1027_v10, 0.0 }
 0x248   :  { %1445 = vmatprep.subr.bf16.mxu0 %v1189_v32  ;;  %v1178_v17 = vpack.c.bf16 %v1151_v33, %v1150_v22  ;;  %v1024_v49 = vadd.f32 %v1357_v63, %v2266_v8  ;;  %v669_v32 = vpop.permute.xlu1 %668 }
 0x249   :  { %1446 = vmatpush3.bf16.msra.mxu0 %v2151_v42  ;;  %v1104_v42 = vadd.f32 %v1417_v7, %v2112_v36  ;;  %v2254_v36 = vld [vmem:[#allocation3_spill] sm:$0xff]  ;;  %v1019_v43 = vadd.f32 %v1354_v39, %v669_v32  ;;  %v2267_v7 = vld [vmem:[#allocation18_spill] sm:$0xff] }
 0x24a   :  { %1447 = vmatprep.subr.bf16.mxu0 %v1188_v57  ;;  %v1096_v25 = vadd.f32 %v1411_v58, %v2254_v36  ;;  %v1016_v57 = vadd.f32 %v1351_v51, %v664_v27  ;;  %v1144_v37 = vmax.f32 %v1024_v49, 0.0  ;;  %v1195_v58 = vpop.permute.xlu0 %1194 }
 0x24b   :  { %v1164_v24 = vmax.f32 %v1104_v42, 0.0  ;;  %v1143_v13 = vmax.f32 %v1019_v43, 0.0 }
 0x24c   :  { %v1162_v44 = vmax.f32 %v1096_v25, 0.0  ;;  %v1175_v1 = vpack.c.bf16 %v1145_v28, %v1144_v37  ;;  %v1142_v61 = vmax.f32 %v1016_v57, 0.0 }
 0x24d   :  { %1448 = vmatpush3.bf16.msra.mxu0 %v2141_v21  ;;  %v1040_v21 = vadd.f32 %v1369_v26, %v2123_v35  ;;  %v1185_v56 = vpack.c.bf16 %v1165_v9, %v1164_v24  ;;  %v2260_v35 = vld [vmem:[#allocation4_spill] sm:$0xff] }
 0x24e   :  { %1449 = vmatprep.subr.bf16.mxu0 %v1187_v41  ;;  %v1032_v30 = vadd.f32 %v1363_v34, %v2260_v35  ;;  %v1184_v11 = vpack.c.bf16 %v1163_v53, %v1162_v44  ;;  %v1174_v4 = vpack.c.bf16 %v1143_v13, %v1142_v61 }
 0x24f   :  { %v1148_v46 = vmax.f32 %v1040_v21, 0.0 }
 0x250   :  { %v1146_v15 = vmax.f32 %v1032_v30, 0.0 }
 0x251   :  { %1450 = vmatpush3.bf16.msra.mxu0 %v2253_v19  ;;  %v1177_v48 = vpack.c.bf16 %v1149_v5, %v1148_v46 }
 0x252   :  { %1451 = vmatprep.subr.bf16.mxu0 %v1186_v16  ;;  %v1176_v14 = vpack.c.bf16 %v1147_v23, %v1146_v15 }
 0x255   :  { %1452 = vmatpush3.bf16.msra.mxu0 %v1178_v17 }
 0x256   :  { %1453 = vmatprep.subr.bf16.mxu0 %v1185_v56 }
 0x259   :  { %1454 = vmatpush3.bf16.msra.mxu0 %v1177_v48 }
 0x25a   :  { %1455 = vmatprep.subr.bf16.mxu0 %v1184_v11 }
 0x25d   :  { %1456 = vmatpush3.bf16.msra.mxu0 %v1176_v14 }
 0x25e   :  { %1457 = vmatprep.subr.bf16.mxu0 %v2267_v7 }
 0x261   :  { %1458 = vmatpush3.bf16.msra.mxu0 %v1175_v1 }
 0x262   :  { %1459 = vmatprep.subr.bf16.mxu0 %v2268_v29 }
 0x265   :  { %1460 = vmatpush3.bf16.msra.mxu0 %v1174_v4 }
 0x268   :  { %1237 = vmatmul.mubr.bf16.vlgmr.msra.gmra.mxu0 %v1314_v0 }
 0x328   :  { %v1461_v41 = vpop.f32.mrf.mxu0 }
 0x32a   :  { %v1462_v26 = vpop.f32.mrf.mxu0 }
 0x32b   :  { %v1463_v62 = vadd.f32 %v1462_v26, %v1461_v41 }
 0x32c   :  { %v1464_v42 = vpop.f32.mrf.mxu0 }
 0x32d   :  { %v1239_v54 = vadd.f32 %v1463_v62, %v1195_v58 }
 0x32e   :  { %v1465_v40 = vpop.f32.mrf.mxu0 }
 0x32f   :  { %1244 = vst [vmem:[%s2234_s7] sm:$0xff] %v1239_v54 }

</bundles_post_ra>
